<compile_context>
chip_gen: v7x
topology: tpu7x:2x2x1
jax: 0.10.0
libtpu: 0.0.40
codegen_flags: <defaults>
</compile_context>

<pallas_src>
import functools

import jax
import jax.numpy as jnp
from jax.experimental import pallas as pl
from jax.experimental.pallas import tpu as pltpu


def _round_up(x, m):
    return ((x + m - 1) // m) * m


def _csh_kernel(x_ref, o_ref, *, approx_recip):
    # x_ref / o_ref: (block_rows, block_cols) lane-dense tiles.
    x = x_ref[...].astype(jnp.float32)        # f32 compute (v5e has no bf16 VPU/EUP)
    e = jnp.exp(x)
    w = e.shape[-1]

    # Partner of lane i is lane i^1 (pairs are consecutive columns).
    nxt = pltpu.roll(e, shift=w - 1, axis=1)  # nxt[..., i] = e[..., (i+1) % w]
    prv = pltpu.roll(e, shift=1, axis=1)      # prv[..., i] = e[..., (i-1) % w]
    lane = jax.lax.broadcasted_iota(jnp.int32, e.shape, 1)
    partner = jnp.where((lane & 1) == 0, nxt, prv)

    den = 1.0 + e + partner                   # 1 + sum(exp) over the pair
    out = e * pl.reciprocal(den, approx=approx_recip)
    o_ref[...] = out.astype(o_ref.dtype)


def cause_specific_hazard(x, *, block_rows=256, block_cols=1024, approx_recip=True):
    """x: (b, v) float array, v even. Returns (b, v//2, 2)."""
    b, v = x.shape
    assert v % 2 == 0, "last dim must be even (pairs of 2)"

    # Tile sizes: (8,128)-aligned, clamped to the (padded) array extent.
    # (256, 1024) f32 = 1 MiB/tile -> double-buffered I/O + roll temps stay well
    # under the 32 MiB scoped VMEM limit on all of v5e / v6e / v7x.
    br = min(block_rows, _round_up(b, 8))
    bc = min(block_cols, _round_up(v, 128))
    bp = _round_up(b, br)
    vp = _round_up(v, bc)

    x_pad = x
    if (bp, vp) != (b, v):
        # Zero padding is harmless: exp(0)=1 only lands in rows/cols we slice
        # off, and pairs never mix real and padded columns (v and bc are even).
        x_pad = jnp.pad(x, ((0, bp - b), (0, vp - v)))

    grid = (bp // br, vp // bc)
    out = pl.pallas_call(
        functools.partial(_csh_kernel, approx_recip=approx_recip),
        out_shape=jax.ShapeDtypeStruct((bp, vp), x.dtype),
        grid=grid,
        in_specs=[pl.BlockSpec((br, bc), lambda i, j: (i, j))],
        out_specs=pl.BlockSpec((br, bc), lambda i, j: (i, j)),
        compiler_params=pltpu.CompilerParams(
            dimension_semantics=("parallel", "parallel"),
            vmem_limit_bytes=32 * 1024 * 1024,
        ),
    )(x_pad)

    out = out[:b, :v]
    return out.reshape(b, v // 2, 2)          # free row-major reshape


if __name__ == "__main__":
    key = jax.random.PRNGKey(0)
    b, v = 2, 16
    x = jax.random.normal(key, (b, v), dtype=jnp.float32)

    out = jax.block_until_ready(cause_specific_hazard(x))

    # Reference in plain JAX (mirrors the PyTorch module exactly).
    xr = x.reshape(b, -1, 2)
    num = jnp.exp(xr)
    den = 1.0 + jnp.sum(jnp.exp(xr), axis=-1, keepdims=True)
    ref = num / den

    assert out.shape == (b, v // 2, 2), out.shape
    # approx_recip=True uses the EUP approximate reciprocal; tolerance reflects that.
    assert jnp.allclose(out, ref, atol=1e-3, rtol=1e-3), (
        f"mismatch vs reference: max abs err {jnp.max(jnp.abs(out - ref))}")

    print("KERNEL_OK")
</pallas_src>

<mosaic_0001>
module attributes {stable_mosaic.version = 11 : i64} {
  func.func @_csh_kernel(%arg0: i32, %arg1: i32, %arg2: memref<8x128xf32, #tpu.memory_space<vmem>>, %arg3: memref<8x128xf32, #tpu.memory_space<vmem>>) attributes {dimension_semantics = [#tpu.dimension_semantics<parallel>, #tpu.dimension_semantics<parallel>], iteration_bounds = array<i64: 1, 1>, scalar_prefetch = 0 : i64, scratch_operands = 0 : i64, tpu.core_type = #tpu.core_type<tc>, window_params = [{transform_indices = @transform_0, window_bounds = array<i64: 8, 128>}, {transform_indices = @transform_1, window_bounds = array<i64: 8, 128>}]} {
    %c0 = arith.constant 0 : index
    %c0_0 = arith.constant 0 : index
    %0 = vector.load %arg2[%c0, %c0_0] : memref<8x128xf32, #tpu.memory_space<vmem>>, vector<8x128xf32>
    %1 = math.exp %0 : vector<8x128xf32>
    %c127_i32 = arith.constant 127 : i32
    %2 = tpu.dynamic_rotate %1 by %c127_i32 dim 1 : vector<8x128xf32>, i32 -> vector<8x128xf32>
    %c1_i32 = arith.constant 1 : i32
    %3 = tpu.dynamic_rotate %1 by %c1_i32 dim 1 : vector<8x128xf32>, i32 -> vector<8x128xf32>
    %4 = tpu.iota {dimensions = array<i32: 1>} : vector<8x128xi32>
    %c1_i32_1 = arith.constant 1 : i32
    %5 = vector.broadcast %c1_i32_1 : i32 to vector<8x128xi32>
    %6 = arith.andi %4, %5 : vector<8x128xi32>
    %c0_i32 = arith.constant 0 : i32
    %7 = vector.broadcast %c0_i32 : i32 to vector<8x128xi32>
    %8 = arith.cmpi eq, %6, %7 : vector<8x128xi32>
    %9 = arith.select %8, %2, %3 : vector<8x128xi1>, vector<8x128xf32>
    %cst = arith.constant 1.000000e+00 : f32
    %10 = vector.broadcast %cst : f32 to vector<8x128xf32>
    %11 = arith.addf %10, %1 : vector<8x128xf32>
    %12 = arith.addf %11, %9 : vector<8x128xf32>
    %13 = tpu.reciprocal %12 {approx = true} : vector<8x128xf32> -> vector<8x128xf32>
    %14 = arith.mulf %1, %13 : vector<8x128xf32>
    %c0_2 = arith.constant 0 : index
    %c0_3 = arith.constant 0 : index
    %15 = vector.load %arg3[%c0_2, %c0_3] : memref<8x128xf32, #tpu.memory_space<vmem>>, vector<8x128xf32>
    tpu.vector_store %arg3[%c0_2, %c0_3], %14 {strides = array<i32>} : memref<8x128xf32, #tpu.memory_space<vmem>>, vector<8x128xf32>,
    return
  }
  func.func @transform_0(%arg0: i32, %arg1: i32) -> (i32, i32) {
    %c0_i32 = arith.constant 0 : i32
    return %arg0, %arg1 : i32, i32
  }
  func.func @transform_1(%arg0: i32, %arg1: i32) -> (i32, i32) {
    %c0_i32 = arith.constant 0 : i32
    return %arg0, %arg1 : i32, i32
  }
}

</mosaic_0001>

<bundles_post_ra>
// kernel: tpu_custom_call.1
= control target key start
LH: loop header
LB: loop body
LE: loop exit
PB: predicated region body
PF: predicated region fallthrough
CT: control target
= control target key end

     0   :  { %6 = vsyncpa [#allocation3], 0  ;;  %s147_s0 = inlined_call_operand.hbm [shape: f32[8,128], index: 0, kind: input, shape index: {}]   ;;  %s148_s1 = inlined_call_operand.hbm [shape: f32[8,128], index: 1, kind: output, shape index: {}]  }
   0x1   :  { %7 = vsyncpa [#allocation4], 0  ;;  %s109_s6 = smov [#allocation2]   ;;  %s61_s10 = scalar_lea.hbm %s147_s0, 128 }
   0x2   :  { %s14_s7 = sshll.u32 %s109_s6, 4  ;;  %p62_p0 = scmp.ne.s32.totalorder %s147_s0, %s61_s10  ;;  %s15_s7 = int_to_ptr.vmem [resolvable:$true] %s14_s7 }
   0x3   :  { %p65_p1 = scmp.lt.u32.totalorder %s61_s10, %s147_s0 }
   0x5   :  { %p67_p2 = pnand %p65_p1, %p62_p0 }
   0x7   :  { %70 = shalt.err (!%p67_p2)
}
   0x8   :  { %s71_s15 = scalar_lea.vmem %s15_s7, 128  ;;  %p76_p4 = scmp.lt.s32.totalorder %s15_s7, %s15_s7 }
   0x9   :  { %p72_p3 = scmp.ne.s32.totalorder %s15_s7, %s71_s15  ;;  %p77_p5 = scmp.lt.s32.totalorder %s71_s15, %s71_s15 }
   0xb   :  { %p78_p6 = por %p77_p5, %p76_p4 }
   0xd   :  { %p79_p7 = pnand %p78_p6, %p72_p3 }
   0xf   :  { %82 = shalt.err (!%p79_p7)
}
  0x10   :  { %17 = dma.hbm_to_vmem [thread:$0]  %s147_s0, 128, %s15_s7, [#allocation3]  }
  0x11   :  { %105 = dma.done.wait [#allocation3], 128  }
  0x12   :  { %106 = vsyncadd [#allocation3], 4294967168  ;;  %v21_v0 = vld [vmem:[#allocation2] sm:$0xff]  ;;  %s110_s18 = smov 127   ;;  %s111_s19 = smov 1   ;;  %v28_v3 = vlaneseq }
  0x13   :  { %v22_v1 = vmul.f32 1.442695, %v21_v0  ;;  %s112_s0 = smov [#allocation5]  }
  0x14   :  { %v29_v4 = vand.u32 127, %v28_v3  ;;  %s44_s20 = sshll.u32 %s112_s0, 4  ;;  %s45_s20 = int_to_ptr.vmem [resolvable:$true] %s44_s20 }
  0x15   :  { %57 = vpow2.f32 %v22_v1  ;;  %s83_s21 = scalar_lea.vmem %s45_s20, 128  ;;  %p88_p9 = scmp.lt.s32.totalorder %s45_s20, %s45_s20 }
  0x16   :  { %v30_v5 = vand.u32 1, %v29_v4  ;;  %p84_p8 = scmp.ne.s32.totalorder %s45_s20, %s83_s21  ;;  %p89_p10 = scmp.lt.s32.totalorder %s83_s21, %s83_s21 }
  0x18   :  { %vm31_vm0 = vcmp.eq.s32.totalorder %v30_v5, 0  ;;  %p90_p11 = por %p89_p10, %p88_p9 }
  0x1a   :  { %p91_p12 = pnand %p90_p11, %p84_p8 }
  0x1f   :  { %v58_v2 = vpop.eup %57 }
  0x20   :  { %24 = vrot.lane.b32.xlu0 %v58_v2, %s110_s18  ;;  %v33_v7 = vadd.f32 1.0, %v58_v2 }
  0x24   :  { %26 = vrot.lane.b32.xlu0 %v58_v2, %s111_s19 }
  0x92   :  { %v25_v6 = vpop.permute.xlu0 %24 }
  0x96   :  { %v27_v8 = vpop.permute.xlu0 %26 }
  0x97   :  { %v32_v9 = vsel %vm31_vm0, %v25_v6, %v27_v8 }
  0x98   :  { %v34_v10 = vadd.f32 %v33_v7, %v32_v9 }
  0x9a   :  { %59 = vrcp.f32 %v34_v10 }
  0xa4   :  { %v60_v11 = vpop.eup %59 }
  0xa5   :  { %v36_v12 = vmul.f32 %v60_v11, %v58_v2 }
  0xa7   :  { %37 = vst [vmem:[#allocation5] sm:$0xff] %v36_v12 }
  0xa8   :  { %94 = shalt.err (!%p91_p12)
}
  0xa9   :  { %s95_s24 = scalar_lea.hbm %s148_s1, 128 }
  0xaa   :  { %p96_p13 = scmp.ne.s32.totalorder %s148_s1, %s95_s24  ;;  %p99_p0 = scmp.lt.u32.totalorder %s95_s24, %s148_s1 }
  0xac   :  { %p101_p1 = pnand %p99_p0, %p96_p13 }
  0xae   :  { %104 = shalt.err (!%p101_p1)
}
  0xaf   :  { %47 = dma.vmem_to_hbm [thread:$0]  %s45_s20, 128, %s148_s1, [#allocation4]  }
  0xb0   :  { %107 = dma.done.wait [#allocation4], 128  }
  0xb1   :  { %108 = vsyncadd [#allocation4], 4294967168 }
  0xb2   :  { %51 = vsyncpa [#allocation3], 1 }
  0xb3   :  { %52 = vsyncpa [#allocation4], 1 }

</bundles_post_ra>
